<compile_context>
chip_gen: v7x
topology: tpu7x:2x2x1
jax: 0.10.0
libtpu: 0.0.40
codegen_flags: <defaults>
</compile_context>

<pallas_src>
import functools
import math

import jax
import jax.numpy as jnp
from jax import lax
from jax.experimental import pallas as pl
from jax.experimental.pallas import tpu as pltpu


# ----------------------------------------------------------------------------
# Host-side construction of the sinusoidal positional-encoding table
# (same math as the PyTorch __init__)
# ----------------------------------------------------------------------------
def make_positional_encoding(max_seq_len, embed_dim, dtype=jnp.float32):
    position = jnp.arange(max_seq_len, dtype=jnp.float32)[:, None]          # (S, 1)
    div_term = jnp.exp(
        jnp.arange(0, embed_dim, 2, dtype=jnp.float32)
        * (-math.log(10000.0) / embed_dim))                                 # (ceil(D/2),)
    pe = jnp.zeros((max_seq_len, embed_dim), jnp.float32)
    pe = pe.at[:, 0::2].set(jnp.sin(position * div_term))
    n_odd = embed_dim // 2                                                  # handles odd D (incl. D=1)
    if n_odd > 0:
        pe = pe.at[:, 1::2].set(jnp.cos(position * div_term)[:, :n_odd])
    return pe.astype(dtype)


# ----------------------------------------------------------------------------
# Fused kernel: out = dropout(x + pe), operating on the flattened (B, L) view
#   seed_ref : scalar-prefetch (SMEM)  (1,) int32
#   x_ref    : (Bt, Lt) VMEM block
#   pe_ref   : (1, Lt)  VMEM block (broadcast over the batch rows)
#   o_ref    : (Bt, Lt) VMEM block
# ----------------------------------------------------------------------------
def _pos_enc_kernel(seed_ref, x_ref, pe_ref, o_ref, *,
                    L, Bt, Lt, apply_dropout, keep_threshold, scale):
    y = x_ref[...] + pe_ref[...]                        # (Bt,Lt) + (1,Lt) broadcast

    if apply_dropout:
        # Global element coordinates of this tile (consistent across any tiling).
        b0 = pl.program_id(0) * Bt
        l0 = pl.program_id(1) * Lt
        rows = lax.broadcasted_iota(jnp.int32, (Bt, Lt), 0) + b0
        cols = lax.broadcasted_iota(jnp.int32, (Bt, Lt), 1) + l0
        # Counter = global flat index, decorrelated per call via the seed
        # (mixed with a large odd constant, not a plain additive offset).
        ctr = rows * L + cols + seed_ref[0] * jnp.int32(1540483477)
        # lowbias32 stateless hash -> well-distributed 32 random bits per element.
        h = ctr.astype(jnp.uint32)
        h = h ^ (h >> 16)
        h = h * jnp.uint32(0x7FEB352D)
        h = h ^ (h >> 15)
        h = h * jnp.uint32(0x846CA68B)
        h = h ^ (h >> 16)
        # 31-bit uniform + signed compare (keep-prob quantized to 2^-31; the
        # bias is unreachable in practice and only matters as keep_prob -> 1).
        bits = (h >> 1).astype(jnp.int32)
        keep = bits < keep_threshold                    # P(keep) = 1 - p
        y = jnp.where(keep, y * scale, jnp.zeros_like(y))   # inverted dropout (torch semantics)
    o_ref[...] = y


# ----------------------------------------------------------------------------
# Tile selection: lane-dense Lt (multiple of 128 when possible), Bt from a
# ~2 MiB per-block budget (safe for v5e/v6e 128 MiB and v7x 64 MiB VMEM),
# plus a split so the "parallel" grid has >=2 steps for the v7x dual-TC case.
# ----------------------------------------------------------------------------
def _choose_tiles(B, L, bytes_per_elem):
    if L % 128 == 0:
        Lt = min(L, 4096)                 # multiple of 128 -> dense vst stores
    else:
        Lt = L                            # small/odd L: full-dim fallback
    target_elems = (2 * 1024 * 1024) // bytes_per_elem
    bt = max(1, target_elems // max(Lt, 1))
    if bt >= B:
        Bt = B                            # full batch dim (always a legal block)
    else:
        Bt = max(8, (bt // 8) * 8)        # sublane dim must be a multiple of 8

    # Make sure the parallel grid has >=2 steps so both v7x TensorCores get work.
    if pl.cdiv(B, Bt) * pl.cdiv(L, Lt) < 2:
        if Lt == L and L % 256 == 0:
            Lt = L // 2
        elif Bt == B and B % 16 == 0:
            Bt = B // 2
    return Bt, Lt


def positional_encoder_forward(x, pe, *, dropout_p=0.5, training=True, seed=0):
    """x: (B, S, D); pe: (S, D) with S == max_seq_len (as in the PyTorch module)."""
    B, S, D = x.shape
    assert pe.shape == (S, D)

    # Lane-dense 2-D view: (B, S*D). PE broadcasts over the batch rows.
    L = S * D
    x2 = x.reshape(B, L)
    pe2 = pe.reshape(1, L).astype(x.dtype)

    itemsize = jnp.dtype(x.dtype).itemsize
    Bt, Lt = _choose_tiles(B, L, itemsize)
    grid = (pl.cdiv(B, Bt), pl.cdiv(L, Lt))

    apply_dropout = bool(training) and float(dropout_p) > 0.0
    keep_prob = 1.0 - float(dropout_p)
    keep_threshold = max(0, min(int(keep_prob * (1 << 31)), (1 << 31) - 1))
    scale = (1.0 / keep_prob) if keep_prob > 0.0 else 0.0

    kernel = functools.partial(
        _pos_enc_kernel,
        L=L, Bt=Bt, Lt=Lt,
        apply_dropout=apply_dropout,
        keep_threshold=keep_threshold,
        scale=scale)

    seed_arr = jnp.asarray([seed], dtype=jnp.int32)

    # Live VMEM: 2x double-buffered x + 2x out + 2x PE tile; cap well under the
    # v7x 64 MiB physical / 32 MiB scoped budget (blocks here are ~2 MiB).
    live_bytes = (4 * Bt * Lt + 2 * Lt) * itemsize
    vmem_limit = int(min(32 * 1024 * 1024, max(8 * 1024 * 1024, 2 * live_bytes)))

    out2 = pl.pallas_call(
        kernel,
        out_shape=jax.ShapeDtypeStruct((B, L), x.dtype),
        grid_spec=pltpu.PrefetchScalarGridSpec(
            num_scalar_prefetch=1,                       # dropout seed -> SMEM
            grid=grid,
            in_specs=[
                pl.BlockSpec((Bt, Lt), lambda b, l, seed: (b, l)),
                pl.BlockSpec((1, Lt),  lambda b, l, seed: (0, l)),   # PE tile (constant over b)
            ],
            out_specs=pl.BlockSpec((Bt, Lt), lambda b, l, seed: (b, l)),
        ),
        compiler_params=pltpu.CompilerParams(
            dimension_semantics=("parallel", "parallel"),
            vmem_limit_bytes=vmem_limit),
    )(seed_arr, x2, pe2)

    return out2.reshape(B, S, D)


# ----------------------------------------------------------------------------
# Self-test
# ----------------------------------------------------------------------------
if __name__ == "__main__":
    key = jax.random.PRNGKey(0)

    # Small shapes consistent with the module: x = [batch, seq_len, embed_dim],
    # positional_encoding = [max_seq_len, embed_dim] with seq_len == max_seq_len.
    B, S, D = 4, 8, 32
    dropout_p = 0.5

    x = jax.random.normal(key, (B, S, D), jnp.float32)
    pe = make_positional_encoding(S, D)
    ref = x + pe[None, :, :]

    # --- eval path (dropout = identity): must match the reference exactly ---
    out_eval = positional_encoder_forward(x, pe, dropout_p=dropout_p, training=False)
    out_eval = jax.block_until_ready(out_eval)
    assert out_eval.shape == (B, S, D)
    assert bool(jnp.all(jnp.isfinite(out_eval)))
    assert float(jnp.max(jnp.abs(out_eval - ref))) < 1e-6

    # --- training path: fused stochastic dropout (counter-based hash PRNG) ---
    # TODO(synk): the dropout mask uses an in-kernel stateless hash PRNG, so it
    # will not reproduce torch's RNG stream bit-for-bit; the math (zero w.p. p,
    # scale 1/(1-p)) matches nn.Dropout.
    out_train = positional_encoder_forward(x, pe, dropout_p=dropout_p,
                                           training=True, seed=1234)
    out_train = jax.block_until_ready(out_train)
    scaled = ref / (1.0 - dropout_p)
    is_zero = jnp.abs(out_train) <= 1e-6
    is_scaled = jnp.abs(out_train - scaled) <= 1e-5 * (1.0 + jnp.abs(scaled))
    assert bool(jnp.all(is_zero | is_scaled)), "dropout output must be 0 or scaled(x+pe)"
    keep_frac = float(jnp.mean((~is_zero).astype(jnp.float32)))
    assert 0.30 < keep_frac < 0.70, f"keep fraction {keep_frac} far from 1-p"

    # Different seeds must give different masks.
    out_train2 = jax.block_until_ready(
        positional_encoder_forward(x, pe, dropout_p=dropout_p, training=True, seed=7))
    assert bool(jnp.any(jnp.abs(out_train - out_train2) > 1e-6))

    # --- default-ish module config (max_seq_len=9, embed_dim=1), eval path ---
    B2, S2, D2 = 2, 9, 1
    x2 = jax.random.normal(jax.random.PRNGKey(1), (B2, S2, D2), jnp.float32)
    pe2 = make_positional_encoding(S2, D2)
    out2 = jax.block_until_ready(
        positional_encoder_forward(x2, pe2, dropout_p=dropout_p, training=False))
    assert float(jnp.max(jnp.abs(out2 - (x2 + pe2[None])))) < 1e-6

    print("KERNEL_OK")
</pallas_src>

<mosaic_0001>
module attributes {stable_mosaic.version = 11 : i64} {
  func.func @_pos_enc_kernel(%arg0: i32, %arg1: i32, %arg2: memref<1xi32, #tpu.memory_space<smem>>, %arg3: memref<4x128xf32, #tpu.memory_space<vmem>>, %arg4: memref<1x128xf32, #tpu.memory_space<vmem>>, %arg5: memref<4x128xf32, #tpu.memory_space<vmem>>) attributes {dimension_semantics = [#tpu.dimension_semantics<parallel>, #tpu.dimension_semantics<parallel>], iteration_bounds = array<i64: 1, 2>, scalar_prefetch = 1 : i64, scratch_operands = 0 : i64, tpu.core_type = #tpu.core_type<tc>, window_params = [{transform_indices = @transform_0, window_bounds = array<i64: 4, 128>}, {transform_indices = @transform_1, window_bounds = array<i64: 1, 128>}, {transform_indices = @transform_2, window_bounds = array<i64: 4, 128>}]} {
    %c0 = arith.constant 0 : index
    %c0_0 = arith.constant 0 : index
    %0 = vector.load %arg3[%c0, %c0_0] : memref<4x128xf32, #tpu.memory_space<vmem>>, vector<4x128xf32>
    %c0_1 = arith.constant 0 : index
    %c0_2 = arith.constant 0 : index
    %1 = vector.load %arg4[%c0_1, %c0_2] : memref<1x128xf32, #tpu.memory_space<vmem>>, vector<1x128xf32>
    %2 = vector.broadcast %1 : vector<1x128xf32> to vector<4x128xf32>
    %3 = arith.addf %0, %2 : vector<4x128xf32>
    %c0_3 = arith.constant 0 : index
    %c0_4 = arith.constant 0 : index
    %4 = vector.load %arg5[%c0_3, %c0_4] : memref<4x128xf32, #tpu.memory_space<vmem>>, vector<4x128xf32>
    tpu.vector_store %arg5[%c0_3, %c0_4], %3 {strides = array<i32>} : memref<4x128xf32, #tpu.memory_space<vmem>>, vector<4x128xf32>,
    return
  }
  func.func @transform_0(%arg0: i32, %arg1: i32, %arg2: memref<1xi32, #tpu.memory_space<smem>>) -> (i32, i32) {
    %c0_i32 = arith.constant 0 : i32
    return %arg0, %arg1 : i32, i32
  }
  func.func @transform_1(%arg0: i32, %arg1: i32, %arg2: memref<1xi32, #tpu.memory_space<smem>>) -> (i32, i32) {
    %c0_i32 = arith.constant 0 : i32
    %c0_i32_0 = arith.constant 0 : i32
    return %c0_i32, %arg1 : i32, i32
  }
  func.func @transform_2(%arg0: i32, %arg1: i32, %arg2: memref<1xi32, #tpu.memory_space<smem>>) -> (i32, i32) {
    %c0_i32 = arith.constant 0 : i32
    return %arg0, %arg1 : i32, i32
  }
}

</mosaic_0001>

<bundles_post_ra>
// kernel: tpu_custom_call.1
= control target key start
LH: loop header
LB: loop body
LE: loop exit
PB: predicated region body
PF: predicated region fallthrough
CT: control target
= control target key end

     0   :  { %9 = vsyncpa [#allocation5], 0  ;;  %s699_s0 = inlined_call_operand.<no memory space> [shape: s32[1], index: 0, kind: input, shape index: {}]   ;;  %s700_s1 = inlined_call_operand.hbm [shape: f32[4,256], index: 1, kind: input, shape index: {}]   ;;  %s701_s2 = inlined_call_operand.vmem [shape: f32[1,256], index: 2, kind: input, shape index: {}]   ;;  %s702_s3 = inlined_call_operand.hbm [shape: f32[4,256], index: 3, kind: output, shape index: {}]  }
   0x1   :  { %11 = vsyncpa [#allocation5 + $0x1], 0 }
   0x2   :  { %12 = vsyncpa [#allocation6], 0 }
   0x3   :  { %14 = vsyncpa [#allocation6 + $0x1], 0  ;;  %s522_s12 = smov 0   ;;  %s524_s13 = smov 0  }
   0x4   :  { %s526_s14 = smov 0   ;;  %s528_s0 = smov 0  }
   0x5   :  { %s530_s15 = smov 0   ;;  %s532_s16 = smov 0  }
   0x6 LB: > { %s310_s17 = sadd.s32 4294967295, %s498_s16   ;;  %s311_s18 = sadd.s32 4294967294, %s498_s16   ;;  %s498_s16 = sphi %s532_s16, %s20_s16   ;;  %s494_s15 = sphi %s530_s15, %s718_s15   ;;  %s490_s0 = sphi %s528_s0, %s717_s0   ;;  %s486_s14 = sphi %s526_s14, %s716_s14   ;;  %s482_s13 = sphi %s524_s13, %s715_s13   ;;  %s478_s12 = sphi %s522_s12, %s714_s12  }
   0x7   : > { %s29_s19 = sadd.s32 1, %s494_s15  ;;  %s41_s20 = sadd.s32 1, %s486_s14 }
   0x8   : > { %p30_p0 = scmp.ge.s32.totalorder %s29_s19, 2  ;;  %p48_p1 = scmp.ne.s32.totalorder %s486_s14, %s482_s13 }
   0x9   : > { %p49_p2 = scmp.eq.s32.totalorder %s498_s16, 0  ;;  %p54_p3 = scmp.ne.s32.totalorder %s482_s13, %s478_s12 }
   0xa   : > { %s720_s19 = smov (%p30_p0, %s29_s19), 0  ;;  %p55_p5 = scmp.eq.s32.totalorder %s310_s17, 0 }
   0xb   : > { %p563_p4 = por %p49_p2, %p48_p1  ;;  %s37_s22 = ssub.s32 %s494_s15, %s720_s19 }
   0xc   : > { %p106_p6 = scmp.eq.s32.totalorder %s310_s17, 1  ;;  %p39_p7 = scmp.eq.s32.totalorder %s37_s22, 0 }
   0xd   : > { %p569_p8 = por %p55_p5, %p54_p3  ;;  %p112_p10 = scmp.eq.s32.totalorder %s311_s18, 1 }
   0xe   : > { %p573_p9 = por %p106_p6, %p48_p1  ;;  %p336_p13 = scmp.lt.s32.totalorder %s498_s16, 2 }
   0xf   : > { %s578_s25 = scalar_select %p39_p7, %s486_s14, %s41_s20  }
  0x10   : > { %s706_s24 = scalar_select %p573_p9, 1, 0 }
  0x11   : > { %p580_p11 = por %p112_p10, %p54_p3  ;;  %s132_s27 = sand.u32 1, %s486_s14  }
  0x12   : > { %s314_s28 = sshll.u32 %s132_s27, 2  ;;  %s315_s29 = sshll.u32 %s494_s15, 6 }
  0x13   : > { %s707_s26 = scalar_select %p580_p11, 1, 0 }
  0x14   : > { %s591_s5 = scalar_lea.hbm %s700_s1, %s315_s29  ;;  %s136_s6 = scalar_lea.vmem [#allocation4], %s314_s28 }
  0x15   : > { %s145_s7 = sshll.u32 %s136_s6, 4  ;;  %p597_p0 = pnand %p336_p13, %p563_p4  ;;  %s593_s7 = int_to_ptr.vmem [resolvable:$true] %s145_s7 }
  0x16   : > { %s133_s9 = scalar_lea.sflag [#allocation5], %s132_s27  ;;  %s386_s10 = scalar_lea.hbm %s591_s5, 64 }
  0x17   : > { %p387_p3 = scmp.ne.s32.totalorder %s591_s5, %s386_s10  ;;  %p388_p5 = pneg %p597_p0 }
  0x18   : > { %s391_s18 = scalar_lea.hbm %s700_s1, 128  ;;  %p392_p4 = scmp.lt.u32.totalorder %s591_s5, %s700_s1 }
  0x19   : > { %p389_p6 = pnand %p388_p5, %p387_p3  ;;  %p393_p10 = scmp.lt.u32.totalorder %s391_s18, %s386_s10 }
  0x1a   : > { %p395_p12 = scmp.lt.u32.totalorder %s386_s10, %s591_s5 }
  0x1b   : > { %p390_p7 = pneg %p389_p6  ;;  %p394_p13 = por %p393_p10, %p392_p4 }
  0x1d   : > { %p396_p1 = por %p395_p12, %p394_p13 }
  0x1f   : > { %p397_p2 = pnand %p396_p1, %p390_p7 }
  0x21   : > { %400 = shalt.err (!%p397_p2)
}
  0x22   : > { %s401_s22 = scalar_lea.vmem %s593_s7, 64  ;;  %s500_s27 = smov [#allocation4]  }
  0x23   : > { %p402_p3 = scmp.ne.s32.totalorder %s593_s7, %s401_s22  ;;  %s406_s28 = sshll.u32 %s500_s27, 4  ;;  %s407_s28 = int_to_ptr.vmem [resolvable:$false] %s406_s28 }
  0x24   : > { %s408_s29 = scalar_lea.vmem %s407_s28, 128  ;;  %p409_p9 = scmp.lt.s32.totalorder %s593_s7, %s407_s28 }
  0x25   : > { %p404_p6 = pnand %p402_p3, %p388_p5  ;;  %p410_p4 = scmp.lt.s32.totalorder %s408_s29, %s401_s22 }
  0x27   : > { %p405_p11 = pneg %p404_p6  ;;  %p411_p10 = por %p410_p4, %p409_p9 }
  0x29   : > { %p412_p12 = pnand %p411_p10, %p405_p11 }
  0x2b   : > { %415 = shalt.err (!%p412_p12)
}
  0x2c   : > { %331 = dma.hbm_to_vmem [thread:$0]  (!%p597_p0), %s591_s5, 64, %s593_s7, %s133_s9  }
  0x2d   : > { %p709_p1 = scmp.lt.s32.totalorder %s498_s16, 3  ;;  %p710_p2 = scmp.ge.s32.totalorder %s498_s16, 1 }
  0x2f   : > { %p157_p5 = pnand %p710_p2, %p709_p1 }
  0x30   : > { %s633_s30 = sand.u32 (!%p157_p5), 1, %s482_s13  }
  0x31   : > { %160 = sbr.rel (%p157_p5) target bundleno = 85 (0x55), region = 28  ;;  %s317_s4 = sshll.u32 (!%p157_p5), %s633_s30, 2 }
  0x32   : > { %s163_s6 = scalar_lea.sflag (!%p157_p5), [#allocation5], %s633_s30  ;;  %s166_s10 = scalar_lea.vmem (!%p157_p5), [#allocation4], %s317_s4 }
  0x38   : > { %469 = dma.done.wait (%p569_p8), %s163_s6, 64  }
  0x39   : > { %471 = vsyncadd (%p569_p8), %s163_s6, 4294967232  ;;  %p190_p9 = scmp.lt.s32.totalorder %s490_s0, 1  ;;  %s189_s11 = scalar_lea.vmem [#allocation7], %s317_s4  ;;  %v193_v0 = vld [vmem:[%s166_s10] sm:$0xf] }
  0x3a   : > { %s219_s17 = sshll.u32 %s189_s11, 4  ;;  %s321_s18 = sshll.u32 %s490_s0, 6  ;;  %s647_s17 = int_to_ptr.vmem [resolvable:$true] %s219_s17 }
  0x3b   : > { %s191_s5 = scalar_select %p190_p9, %s490_s0, 1 }
  0x3c   : > { %s652_s21 = scalar_lea.hbm %s702_s3, %s321_s18  ;;  %s204_s22 = scalar_lea.sflag [#allocation6], %s633_s30 }
  0x3d   : > { %s192_s9 = scalar_lea.vmem %s701_s2, %s191_s5  ;;  %s416_s27 = scalar_lea.vmem %s647_s17, 64 }
  0x3e   : > { %v319_v1 = vld [vmem:[%s192_s9] ss:$0 sm:$0xff]  ;;  %p417_p8 = scmp.ne.s32.totalorder %s647_s17, %s416_s27  ;;  %p711_p11 = scmp.ne.s32.totalorder %s706_s24, 0 }
  0x3f   : > { %v201_v2 = vadd.f32 %v319_v1, %v193_v0  ;;  %s501_s0 = smov [#allocation7]  }
  0x40   : > { %p418_p0 = pnand %p417_p8, %p711_p11  ;;  %s420_s28 = sshll.u32 %s501_s0, 4  ;;  %s421_s28 = int_to_ptr.vmem [resolvable:$false] %s420_s28 }
  0x41   : > { %202 = vst [vmem:[%s189_s11] sm:$0xf] %v201_v2  ;;  %s422_s29 = scalar_lea.vmem %s421_s28, 128  ;;  %p423_p13 = scmp.lt.s32.totalorder %s647_s17, %s421_s28 }
  0x42   : > { %p419_p7 = pneg %p418_p0  ;;  %p424_p3 = scmp.lt.s32.totalorder %s422_s29, %s416_s27 }
  0x44   : > { %p425_p6 = por %p424_p3, %p423_p13 }
  0x46   : > { %p426_p4 = pnand %p425_p6, %p419_p7 }
  0x48   : > { %429 = shalt.err (!%p426_p4)
}
  0x49   : > { %s430_s30 = scalar_lea.hbm %s652_s21, 64  ;;  %s434_s10 = scalar_lea.hbm %s702_s3, 128 }
  0x4a   : > { %p431_p10 = scmp.ne.s32.totalorder %s652_s21, %s430_s30  ;;  %p435_p2 = scmp.lt.u32.totalorder %s652_s21, %s702_s3 }
  0x4b   : > { %p436_p5 = scmp.lt.u32.totalorder %s434_s10, %s430_s30  ;;  %p438_p8 = scmp.lt.u32.totalorder %s430_s30, %s652_s21 }
  0x4c   : > { %p432_p12 = pnand %p431_p10, %p711_p11 }
  0x4d   : > { %p437_p9 = por %p436_p5, %p435_p2 }
  0x4e   : > { %p433_p1 = pneg %p432_p12 }
  0x4f   : > { %p439_p0 = por %p438_p8, %p437_p9 }
  0x51   : > { %p440_p7 = pnand %p439_p0, %p433_p1 }
  0x53   : > { %443 = shalt.err (!%p440_p7)
}
  0x54   : > { %326 = dma.vmem_to_hbm [thread:$0]  (%p711_p11), %s647_s17, 64, %s652_s21, %s204_s22  }
  0x55 PF: > { %s231_s8 = sand.u32 1, %s478_s12   ;;  %p712_p13 = scmp.ne.s32.totalorder %s707_s26, 0 }
  0x56   : > { %p713_p3 = scmp.ge.s32.totalorder %s498_s16, 2  ;;  %s232_s9 = scalar_lea.sflag [#allocation6], %s231_s8 }
  0x58   : > { %p333_p6 = pnand %p713_p3, %p712_p13 }
  0x5a   : > { %473 = dma.done.wait (!%p333_p6), %s232_s9, 64  }
  0x5b   : > { %475 = vsyncadd (!%p333_p6), %s232_s9, 4294967232  ;;  %s20_s16 = sadd.s32 1, %s498_s16   ;;  %s714_s12 = smov %s482_s13 }
  0x5c   : > { %p17_p4 = scmp.ge.s32.totalorder %s20_s16, 4   ;;  %s715_s13 = smov %s486_s14 }
  0x5d   : > { %s716_s14 = smov %s578_s25  ;;  %s717_s0 = smov %s494_s15 }
  0x5e   : > { %s718_s15 = smov %s720_s19  ;;  %19 = sbr.rel (!%p17_p4) target bundleno = 6 (0x6), region = 76 }
  0x65   :  { %237 = vsyncpa [#allocation5], 1 }
  0x66   :  { %239 = vsyncpa [#allocation5 + $0x1], 1 }
  0x67   :  { %240 = vsyncpa [#allocation6], 1 }
  0x68   :  { %242 = vsyncpa [#allocation6 + $0x1], 1 }

</bundles_post_ra>
